<compile_context>
chip_gen: v7x
topology: tpu7x:2x2x1
jax: 0.10.0
libtpu: 0.0.40
codegen_flags: <defaults>
</compile_context>

<pallas_src>
import jax
import jax.numpy as jnp
from jax import lax
from jax.experimental import pallas as pl
from jax.experimental.pallas import tpu as pltpu

# ----------------------------- static problem sizes -------------------------
KH = KW = 3
C_IN, C_MID, C_OUT = 3, 6, 6
N, H, W = 2, 16, 16
OH1, OW1 = H - KH + 1, W - KW + 1          # 14, 14  (conv1 VALID output)
OH2, OW2 = OH1 - KH + 1, OW1 - KW + 1      # 12, 12  (conv2 VALID output)

C_PAD = 8                                   # channels padded to one sublane group
KCOL = KH * KW * C_PAD                      # 72: im2col contraction length


def _round_up(v, m):
    return ((v + m - 1) // m) * m


R = N * H * W                               # 512 (= 4*128) rows on the (n,h,w) grid
MAXD = (KH - 1) * W + (KW - 1)              # 34: largest flat-row shift of a 3x3 tap
R_Y1 = _round_up(R + MAXD, 128)             # 640: conv1 rows computed (halo for conv2)
R_X = _round_up(R_Y1 + MAXD, 128)           # 768: zero-padded input rows (halo for conv1)

# Full-grid + final-mask scheme is only valid for stride-1 VALID 3x3 convs where
# every y1 row read by a surviving conv2 row stays inside the same image.
assert OH2 == H - 2 * (KH - 1) and OW2 == W - 2 * (KW - 1)
assert R_Y1 >= R + MAXD and R_X >= R_Y1 + MAXD
assert R % 128 == 0 and R_Y1 % 128 == 0 and R_X % 128 == 0


# ------------------------------ fused Pallas kernel --------------------------

def _fused_testnet_kernel(x_ref, w1_ref, b1_ref, w2_ref, b2_ref, mask_ref,
                          sum_ref, xcol_ref, y1_ref, ycol_ref):
    # x_ref   : (C_PAD, R_X)   f32  channels on sublanes, flat (n,h,w) rows on lanes
    # w1_ref  : (C_PAD, KCOL)  f32  tap-major conv1 weights (padded rows/cols are 0)
    # b1_ref  : (C_PAD, 1)     f32
    # w2_ref  : (C_PAD, KCOL)  f32
    # b2_ref  : (C_PAD, 1)     f32
    # mask_ref: (1, R)         f32  precomputed conv2-validity mask
    # sum_ref : (1, 1)         f32  SMEM scalar loss
    # xcol_ref: (KCOL, R_Y1)   f32  VMEM scratch: conv1 im2col columns
    # y1_ref  : (C_PAD, R_Y1)  f32  VMEM scratch: conv1 activation (never leaves VMEM)
    # ycol_ref: (KCOL, R)      f32  VMEM scratch: conv2 im2col columns

    # ---- conv1: 9 shifted-window copies (sublane-aligned) + ONE f32 MXU matmul ----
    for t in range(KH * KW):
        d = (t // KW) * W + (t % KW)                    # static flat-row shift of tap t
        xcol_ref[t * C_PAD:(t + 1) * C_PAD, :] = x_ref[:, d:d + R_Y1]
    y1 = jnp.dot(w1_ref[...], xcol_ref[...], preferred_element_type=jnp.float32)
    y1_ref[...] = jnp.maximum(y1 + b1_ref[...], 0.0)    # padded channel rows stay 0

    # ---- conv2: same trick on the VMEM-resident conv1 activation ----
    for t in range(KH * KW):
        d = (t // KW) * W + (t % KW)
        ycol_ref[t * C_PAD:(t + 1) * C_PAD, :] = y1_ref[:, d:d + R]
    y2 = jnp.dot(w2_ref[...], ycol_ref[...], preferred_element_type=jnp.float32)
    y2 = jnp.maximum(y2 + b2_ref[...], 0.0)             # (C_PAD, R) f32

    # ---- masked global sum: mask zeroes invalid / halo / cross-batch rows ----
    sum_ref[0, 0] = jnp.sum(y2 * mask_ref[...])


# --------------------------------- JAX glue ----------------------------------

def _testnet_with_loss_impl(x_nchw, params):
    """Forward of TestNetWithLoss: scalar sum of TestNet(input)."""
    # NCHW -> flat (n,h,w)-major rows on lanes, channels on sublanes, zero-padded halo.
    x_rows = jnp.transpose(x_nchw, (0, 2, 3, 1)).reshape(R, C_IN)            # (512, 3)
    x_cr = jnp.zeros((C_PAD, R_X), jnp.float32).at[:C_IN, :R].set(x_rows.T)  # (8, 768)

    # Tap-major, channel-padded weights:  w[m, t*C_PAD + c] = W[kh, kw, c, m]
    w1t = jnp.transpose(params["w1"], (3, 0, 1, 2)).reshape(C_MID, KH * KW, C_IN)
    w1p = jnp.zeros((C_PAD, KH * KW, C_PAD), jnp.float32)
    w1p = w1p.at[:C_MID, :, :C_IN].set(w1t).reshape(C_PAD, KCOL)
    w2t = jnp.transpose(params["w2"], (3, 0, 1, 2)).reshape(C_OUT, KH * KW, C_MID)
    w2p = jnp.zeros((C_PAD, KH * KW, C_PAD), jnp.float32)
    w2p = w2p.at[:C_OUT, :, :C_MID].set(w2t).reshape(C_PAD, KCOL)

    b1p = jnp.zeros((C_PAD, 1), jnp.float32).at[:C_MID, 0].set(params["b1"])
    b2p = jnp.zeros((C_PAD, 1), jnp.float32).at[:C_OUT, 0].set(params["b2"])

    # conv2-validity mask: depends only on static shapes -> constant-folds in XLA.
    r = jnp.arange(R)
    hh = (r % (H * W)) // W
    ww = r % W
    mask = ((hh < OH2) & (ww < OW2)).astype(jnp.float32).reshape(1, R)

    vmem = pl.BlockSpec(memory_space=pltpu.MemorySpace.VMEM)
    out = pl.pallas_call(
        _fused_testnet_kernel,
        out_shape=jax.ShapeDtypeStruct((1, 1), jnp.float32),
        in_specs=[vmem] * 6,
        out_specs=pl.BlockSpec(memory_space=pltpu.MemorySpace.SMEM),
        scratch_shapes=[
            pltpu.VMEM((KCOL, R_Y1), jnp.float32),    # conv1 im2col columns
            pltpu.VMEM((C_PAD, R_Y1), jnp.float32),   # conv1 activation
            pltpu.VMEM((KCOL, R), jnp.float32),       # conv2 im2col columns
        ],
    )(x_cr, w1p, b1p, w2p, b2p, mask)
    return out[0, 0]


testnet_with_loss = jax.jit(_testnet_with_loss_impl)


# ----------------------- deterministic parameter init ------------------------

def init_params(key):
    k1, k2, k3, k4 = jax.random.split(key, 4)
    return dict(
        w1=jax.random.normal(k1, (KH, KW, C_IN, C_MID), jnp.float32) * 0.1,
        b1=jax.random.normal(k2, (C_MID,), jnp.float32) * 0.1,
        w2=jax.random.normal(k3, (KH, KW, C_MID, C_OUT), jnp.float32) * 0.1,
        b2=jax.random.normal(k4, (C_OUT,), jnp.float32) * 0.1,
    )


# ---------------------------------- reference --------------------------------

def reference(x_nchw, params):
    w1 = jnp.transpose(params["w1"], (3, 2, 0, 1))          # HWIO -> OIHW
    y = lax.conv_general_dilated(x_nchw, w1, (1, 1), "VALID",
                                 dimension_numbers=("NCHW", "OIHW", "NCHW"))
    y = jax.nn.relu(y + params["b1"][None, :, None, None])
    w2 = jnp.transpose(params["w2"], (3, 2, 0, 1))
    y = lax.conv_general_dilated(y, w2, (1, 1), "VALID",
                                 dimension_numbers=("NCHW", "OIHW", "NCHW"))
    y = jax.nn.relu(y + params["b2"][None, :, None, None])
    return jnp.sum(y)


if __name__ == "__main__":
    key = jax.random.PRNGKey(0)
    kx, kp = jax.random.split(key)
    x = jax.random.normal(kx, (N, C_IN, H, W), jnp.float32)   # NCHW, like PyTorch
    params = init_params(kp)

    out = jax.block_until_ready(testnet_with_loss(x, params))
    ref = reference(x, params)

    # everything is f32 now -> tight tolerance
    assert jnp.allclose(out, ref, rtol=1e-4, atol=1e-3), (out, ref)
    print("KERNEL_OK")
</pallas_src>

<mosaic_0001>
module attributes {stable_mosaic.version = 11 : i64} {
  func.func @_fused_testnet_kernel(%arg0: memref<8x768xf32, #tpu.memory_space<vmem>>, %arg1: memref<8x72xf32, #tpu.memory_space<vmem>>, %arg2: memref<8x1xf32, #tpu.memory_space<vmem>>, %arg3: memref<8x72xf32, #tpu.memory_space<vmem>>, %arg4: memref<8x1xf32, #tpu.memory_space<vmem>>, %arg5: memref<1x512xf32, #tpu.memory_space<vmem>>, %arg6: memref<1x1xf32, #tpu.memory_space<smem>>, %arg7: memref<72x640xf32, #tpu.memory_space<vmem>>, %arg8: memref<8x640xf32, #tpu.memory_space<vmem>>, %arg9: memref<72x512xf32, #tpu.memory_space<vmem>>) attributes {dimension_semantics = [], scalar_prefetch = 0 : i64, scratch_operands = 3 : i64, tpu.core_type = #tpu.core_type<tc>} {
    %c0 = arith.constant 0 : index
    %c0_0 = arith.constant 0 : index
    %0 = vector.load %arg0[%c0, %c0_0] : memref<8x768xf32, #tpu.memory_space<vmem>>, vector<8x640xf32>
    %c0_1 = arith.constant 0 : index
    %c0_2 = arith.constant 0 : index
    %1 = vector.load %arg7[%c0_1, %c0_2] : memref<72x640xf32, #tpu.memory_space<vmem>>, vector<8x640xf32>
    tpu.vector_store %arg7[%c0_1, %c0_2], %0 {strides = array<i32>} : memref<72x640xf32, #tpu.memory_space<vmem>>, vector<8x640xf32>,
    %c0_3 = arith.constant 0 : index
    %c1 = arith.constant 1 : index
    %2 = vector.load %arg0[%c0_3, %c1] : memref<8x768xf32, #tpu.memory_space<vmem>>, vector<8x640xf32>
    %c8 = arith.constant 8 : index
    %c0_4 = arith.constant 0 : index
    %3 = vector.load %arg7[%c8, %c0_4] : memref<72x640xf32, #tpu.memory_space<vmem>>, vector<8x640xf32>
    tpu.vector_store %arg7[%c8, %c0_4], %2 {strides = array<i32>} : memref<72x640xf32, #tpu.memory_space<vmem>>, vector<8x640xf32>,
    %c0_5 = arith.constant 0 : index
    %c2 = arith.constant 2 : index
    %4 = vector.load %arg0[%c0_5, %c2] : memref<8x768xf32, #tpu.memory_space<vmem>>, vector<8x640xf32>
    %c16 = arith.constant 16 : index
    %c0_6 = arith.constant 0 : index
    %5 = vector.load %arg7[%c16, %c0_6] : memref<72x640xf32, #tpu.memory_space<vmem>>, vector<8x640xf32>
    tpu.vector_store %arg7[%c16, %c0_6], %4 {strides = array<i32>} : memref<72x640xf32, #tpu.memory_space<vmem>>, vector<8x640xf32>,
    %c0_7 = arith.constant 0 : index
    %c16_8 = arith.constant 16 : index
    %6 = vector.load %arg0[%c0_7, %c16_8] : memref<8x768xf32, #tpu.memory_space<vmem>>, vector<8x640xf32>
    %c24 = arith.constant 24 : index
    %c0_9 = arith.constant 0 : index
    %7 = vector.load %arg7[%c24, %c0_9] : memref<72x640xf32, #tpu.memory_space<vmem>>, vector<8x640xf32>
    tpu.vector_store %arg7[%c24, %c0_9], %6 {strides = array<i32>} : memref<72x640xf32, #tpu.memory_space<vmem>>, vector<8x640xf32>,
    %c0_10 = arith.constant 0 : index
    %c17 = arith.constant 17 : index
    %8 = vector.load %arg0[%c0_10, %c17] : memref<8x768xf32, #tpu.memory_space<vmem>>, vector<8x640xf32>
    %c32 = arith.constant 32 : index
    %c0_11 = arith.constant 0 : index
    %9 = vector.load %arg7[%c32, %c0_11] : memref<72x640xf32, #tpu.memory_space<vmem>>, vector<8x640xf32>
    tpu.vector_store %arg7[%c32, %c0_11], %8 {strides = array<i32>} : memref<72x640xf32, #tpu.memory_space<vmem>>, vector<8x640xf32>,
    %c0_12 = arith.constant 0 : index
    %c18 = arith.constant 18 : index
    %10 = vector.load %arg0[%c0_12, %c18] : memref<8x768xf32, #tpu.memory_space<vmem>>, vector<8x640xf32>
    %c40 = arith.constant 40 : index
    %c0_13 = arith.constant 0 : index
    %11 = vector.load %arg7[%c40, %c0_13] : memref<72x640xf32, #tpu.memory_space<vmem>>, vector<8x640xf32>
    tpu.vector_store %arg7[%c40, %c0_13], %10 {strides = array<i32>} : memref<72x640xf32, #tpu.memory_space<vmem>>, vector<8x640xf32>,
    %c0_14 = arith.constant 0 : index
    %c32_15 = arith.constant 32 : index
    %12 = vector.load %arg0[%c0_14, %c32_15] : memref<8x768xf32, #tpu.memory_space<vmem>>, vector<8x640xf32>
    %c48 = arith.constant 48 : index
    %c0_16 = arith.constant 0 : index
    %13 = vector.load %arg7[%c48, %c0_16] : memref<72x640xf32, #tpu.memory_space<vmem>>, vector<8x640xf32>
    tpu.vector_store %arg7[%c48, %c0_16], %12 {strides = array<i32>} : memref<72x640xf32, #tpu.memory_space<vmem>>, vector<8x640xf32>,
    %c0_17 = arith.constant 0 : index
    %c33 = arith.constant 33 : index
    %14 = vector.load %arg0[%c0_17, %c33] : memref<8x768xf32, #tpu.memory_space<vmem>>, vector<8x640xf32>
    %c56 = arith.constant 56 : index
    %c0_18 = arith.constant 0 : index
    %15 = vector.load %arg7[%c56, %c0_18] : memref<72x640xf32, #tpu.memory_space<vmem>>, vector<8x640xf32>
    tpu.vector_store %arg7[%c56, %c0_18], %14 {strides = array<i32>} : memref<72x640xf32, #tpu.memory_space<vmem>>, vector<8x640xf32>,
    %c0_19 = arith.constant 0 : index
    %c34 = arith.constant 34 : index
    %16 = vector.load %arg0[%c0_19, %c34] : memref<8x768xf32, #tpu.memory_space<vmem>>, vector<8x640xf32>
    %c64 = arith.constant 64 : index
    %c0_20 = arith.constant 0 : index
    %17 = vector.load %arg7[%c64, %c0_20] : memref<72x640xf32, #tpu.memory_space<vmem>>, vector<8x640xf32>
    tpu.vector_store %arg7[%c64, %c0_20], %16 {strides = array<i32>} : memref<72x640xf32, #tpu.memory_space<vmem>>, vector<8x640xf32>,
    %c0_21 = arith.constant 0 : index
    %c0_22 = arith.constant 0 : index
    %18 = vector.load %arg1[%c0_21, %c0_22] : memref<8x72xf32, #tpu.memory_space<vmem>>, vector<8x72xf32>
    %c0_23 = arith.constant 0 : index
    %c0_24 = arith.constant 0 : index
    %19 = vector.load %arg7[%c0_23, %c0_24] : memref<72x640xf32, #tpu.memory_space<vmem>>, vector<72x640xf32>
    %cst = arith.constant dense<0.000000e+00> : vector<8x640xf32>
    %20 = tpu.matmul %18, %19, %cst {dimension_numbers = #tpu.dot_dimension_numbers<[1], [0], [0], [1], [0, 0, 1, 1], [], []>} : vector<8x72xf32>, vector<72x640xf32>, vector<8x640xf32> -> vector<8x640xf32>
    %c0_25 = arith.constant 0 : index
    %c0_26 = arith.constant 0 : index
    %21 = vector.load %arg2[%c0_25, %c0_26] : memref<8x1xf32, #tpu.memory_space<vmem>>, vector<8x1xf32>
    %22 = vector.broadcast %21 : vector<8x1xf32> to vector<8x640xf32>
    %23 = arith.addf %20, %22 : vector<8x640xf32>
    %cst_27 = arith.constant 0.000000e+00 : f32
    %24 = vector.broadcast %cst_27 : f32 to vector<8x640xf32>
    %25 = arith.maximumf %23, %24 : vector<8x640xf32>
    %c0_28 = arith.constant 0 : index
    %c0_29 = arith.constant 0 : index
    %26 = vector.load %arg8[%c0_28, %c0_29] : memref<8x640xf32, #tpu.memory_space<vmem>>, vector<8x640xf32>
    tpu.vector_store %arg8[%c0_28, %c0_29], %25 {strides = array<i32>} : memref<8x640xf32, #tpu.memory_space<vmem>>, vector<8x640xf32>,
    %c0_30 = arith.constant 0 : index
    %c0_31 = arith.constant 0 : index
    %27 = vector.load %arg8[%c0_30, %c0_31] : memref<8x640xf32, #tpu.memory_space<vmem>>, vector<8x512xf32>
    %c0_32 = arith.constant 0 : index
    %c0_33 = arith.constant 0 : index
    %28 = vector.load %arg9[%c0_32, %c0_33] : memref<72x512xf32, #tpu.memory_space<vmem>>, vector<8x512xf32>
    tpu.vector_store %arg9[%c0_32, %c0_33], %27 {strides = array<i32>} : memref<72x512xf32, #tpu.memory_space<vmem>>, vector<8x512xf32>,
    %c0_34 = arith.constant 0 : index
    %c1_35 = arith.constant 1 : index
    %29 = vector.load %arg8[%c0_34, %c1_35] : memref<8x640xf32, #tpu.memory_space<vmem>>, vector<8x512xf32>
    %c8_36 = arith.constant 8 : index
    %c0_37 = arith.constant 0 : index
    %30 = vector.load %arg9[%c8_36, %c0_37] : memref<72x512xf32, #tpu.memory_space<vmem>>, vector<8x512xf32>
    tpu.vector_store %arg9[%c8_36, %c0_37], %29 {strides = array<i32>} : memref<72x512xf32, #tpu.memory_space<vmem>>, vector<8x512xf32>,
    %c0_38 = arith.constant 0 : index
    %c2_39 = arith.constant 2 : index
    %31 = vector.load %arg8[%c0_38, %c2_39] : memref<8x640xf32, #tpu.memory_space<vmem>>, vector<8x512xf32>
    %c16_40 = arith.constant 16 : index
    %c0_41 = arith.constant 0 : index
    %32 = vector.load %arg9[%c16_40, %c0_41] : memref<72x512xf32, #tpu.memory_space<vmem>>, vector<8x512xf32>
    tpu.vector_store %arg9[%c16_40, %c0_41], %31 {strides = array<i32>} : memref<72x512xf32, #tpu.memory_space<vmem>>, vector<8x512xf32>,
    %c0_42 = arith.constant 0 : index
    %c16_43 = arith.constant 16 : index
    %33 = vector.load %arg8[%c0_42, %c16_43] : memref<8x640xf32, #tpu.memory_space<vmem>>, vector<8x512xf32>
    %c24_44 = arith.constant 24 : index
    %c0_45 = arith.constant 0 : index
    %34 = vector.load %arg9[%c24_44, %c0_45] : memref<72x512xf32, #tpu.memory_space<vmem>>, vector<8x512xf32>
    tpu.vector_store %arg9[%c24_44, %c0_45], %33 {strides = array<i32>} : memref<72x512xf32, #tpu.memory_space<vmem>>, vector<8x512xf32>,
    %c0_46 = arith.constant 0 : index
    %c17_47 = arith.constant 17 : index
    %35 = vector.load %arg8[%c0_46, %c17_47] : memref<8x640xf32, #tpu.memory_space<vmem>>, vector<8x512xf32>
    %c32_48 = arith.constant 32 : index
    %c0_49 = arith.constant 0 : index
    %36 = vector.load %arg9[%c32_48, %c0_49] : memref<72x512xf32, #tpu.memory_space<vmem>>, vector<8x512xf32>
    tpu.vector_store %arg9[%c32_48, %c0_49], %35 {strides = array<i32>} : memref<72x512xf32, #tpu.memory_space<vmem>>, vector<8x512xf32>,
    %c0_50 = arith.constant 0 : index
    %c18_51 = arith.constant 18 : index
    %37 = vector.load %arg8[%c0_50, %c18_51] : memref<8x640xf32, #tpu.memory_space<vmem>>, vector<8x512xf32>
    %c40_52 = arith.constant 40 : index
    %c0_53 = arith.constant 0 : index
    %38 = vector.load %arg9[%c40_52, %c0_53] : memref<72x512xf32, #tpu.memory_space<vmem>>, vector<8x512xf32>
    tpu.vector_store %arg9[%c40_52, %c0_53], %37 {strides = array<i32>} : memref<72x512xf32, #tpu.memory_space<vmem>>, vector<8x512xf32>,
    %c0_54 = arith.constant 0 : index
    %c32_55 = arith.constant 32 : index
    %39 = vector.load %arg8[%c0_54, %c32_55] : memref<8x640xf32, #tpu.memory_space<vmem>>, vector<8x512xf32>
    %c48_56 = arith.constant 48 : index
    %c0_57 = arith.constant 0 : index
    %40 = vector.load %arg9[%c48_56, %c0_57] : memref<72x512xf32, #tpu.memory_space<vmem>>, vector<8x512xf32>
    tpu.vector_store %arg9[%c48_56, %c0_57], %39 {strides = array<i32>} : memref<72x512xf32, #tpu.memory_space<vmem>>, vector<8x512xf32>,
    %c0_58 = arith.constant 0 : index
    %c33_59 = arith.constant 33 : index
    %41 = vector.load %arg8[%c0_58, %c33_59] : memref<8x640xf32, #tpu.memory_space<vmem>>, vector<8x512xf32>
    %c56_60 = arith.constant 56 : index
    %c0_61 = arith.constant 0 : index
    %42 = vector.load %arg9[%c56_60, %c0_61] : memref<72x512xf32, #tpu.memory_space<vmem>>, vector<8x512xf32>
    tpu.vector_store %arg9[%c56_60, %c0_61], %41 {strides = array<i32>} : memref<72x512xf32, #tpu.memory_space<vmem>>, vector<8x512xf32>,
    %c0_62 = arith.constant 0 : index
    %c34_63 = arith.constant 34 : index
    %43 = vector.load %arg8[%c0_62, %c34_63] : memref<8x640xf32, #tpu.memory_space<vmem>>, vector<8x512xf32>
    %c64_64 = arith.constant 64 : index
    %c0_65 = arith.constant 0 : index
    %44 = vector.load %arg9[%c64_64, %c0_65] : memref<72x512xf32, #tpu.memory_space<vmem>>, vector<8x512xf32>
    tpu.vector_store %arg9[%c64_64, %c0_65], %43 {strides = array<i32>} : memref<72x512xf32, #tpu.memory_space<vmem>>, vector<8x512xf32>,
    %c0_66 = arith.constant 0 : index
    %c0_67 = arith.constant 0 : index
    %45 = vector.load %arg3[%c0_66, %c0_67] : memref<8x72xf32, #tpu.memory_space<vmem>>, vector<8x72xf32>
    %c0_68 = arith.constant 0 : index
    %c0_69 = arith.constant 0 : index
    %46 = vector.load %arg9[%c0_68, %c0_69] : memref<72x512xf32, #tpu.memory_space<vmem>>, vector<72x512xf32>
    %cst_70 = arith.constant dense<0.000000e+00> : vector<8x512xf32>
    %47 = tpu.matmul %45, %46, %cst_70 {dimension_numbers = #tpu.dot_dimension_numbers<[1], [0], [0], [1], [0, 0, 1, 1], [], []>} : vector<8x72xf32>, vector<72x512xf32>, vector<8x512xf32> -> vector<8x512xf32>
    %c0_71 = arith.constant 0 : index
    %c0_72 = arith.constant 0 : index
    %48 = vector.load %arg4[%c0_71, %c0_72] : memref<8x1xf32, #tpu.memory_space<vmem>>, vector<8x1xf32>
    %49 = vector.broadcast %48 : vector<8x1xf32> to vector<8x512xf32>
    %50 = arith.addf %47, %49 : vector<8x512xf32>
    %cst_73 = arith.constant 0.000000e+00 : f32
    %51 = vector.broadcast %cst_73 : f32 to vector<8x512xf32>
    %52 = arith.maximumf %50, %51 : vector<8x512xf32>
    %c0_74 = arith.constant 0 : index
    %c0_75 = arith.constant 0 : index
    %53 = vector.load %arg5[%c0_74, %c0_75] : memref<1x512xf32, #tpu.memory_space<vmem>>, vector<1x512xf32>
    %54 = vector.broadcast %53 : vector<1x512xf32> to vector<8x512xf32>
    %55 = arith.mulf %52, %54 : vector<8x512xf32>
    %56 = vector.shape_cast %55 : vector<8x512xf32> to vector<1x8x512xf32>
    %cst_76 = arith.constant dense<0.000000e+00> : vector<1xf32>
    %57 = vector.multi_reduction <add>, %56, %cst_76 [1, 2] : vector<1x8x512xf32> to vector<1xf32>
    %58 = vector.shape_cast %57 : vector<1xf32> to vector<1x1x1xf32>
    %59 = vector.extract %58[0, 0, 0] : f32 from vector<1x1x1xf32>
    %c0_77 = arith.constant 0 : index
    %c0_78 = arith.constant 0 : index
    %60 = memref.load %arg6[%c0_77, %c0_78] : memref<1x1xf32, #tpu.memory_space<smem>>
    memref.store %59, %arg6[%c0_77, %c0_78] : memref<1x1xf32, #tpu.memory_space<smem>>
    return
  }
}

</mosaic_0001>

<bundles_post_ra>
// kernel: _testnet_with_loss_impl.1
= control target key start
LH: loop header
LB: loop body
LE: loop exit
PB: predicated region body
PF: predicated region fallthrough
CT: control target
= control target key end

     0   :  { %s1834_s0 = inlined_call_operand.vmem [shape: f32[8,768], index: 0, kind: input, shape index: {}]   ;;  %s1835_s1 = inlined_call_operand.vmem [shape: f32[8,72], index: 1, kind: input, shape index: {}]   ;;  %s1836_s2 = inlined_call_operand.vmem [shape: f32[8,1], index: 2, kind: input, shape index: {}]   ;;  %s1837_s3 = inlined_call_operand.vmem [shape: f32[8,72], index: 3, kind: input, shape index: {}]   ;;  %s1838_s4 = inlined_call_operand.vmem [shape: f32[8,1], index: 4, kind: input, shape index: {}]   ;;  %s1839_s5 = inlined_call_operand.vmem [shape: f32[1,512], index: 5, kind: input, shape index: {}]   ;;  %s1840_s6 = inlined_call_operand.hbm [shape: f32[1,1], index: 6, kind: output, shape index: {}]  }
   0x1   :  { %v1492_v0 = vld [vmem:[%s1834_s0 + $0x8] sm:$0xff]  ;;  %v1497_v1 = vld [vmem:[%s1834_s0 + $0x10] sm:$0xff]  ;;  %v1502_v2 = vld [vmem:[%s1834_s0] sm:$0xff] }
   0x2   :  { %v1278_v3 = vpack.i.bf16 %v1497_v1, %v1492_v0  ;;  %v1509_v4 = vld [vmem:[%s1834_s0 + $0x18] sm:$0xff] }
   0x3   :  { %11 = vsyncpa [#allocation6], 0  ;;  %s1441_s29 = smov 126   ;;  %s1442_s30 = smov 127   ;;  %v1273_v5 = vpack.i.bf16 %v1509_v4, %v1502_v2  ;;  %v1529_v6 = vld [vmem:[%s1834_s0 + $0x20] sm:$0xff]  ;;  %v39_v7 = vld [vmem:[%s1834_s0 + $0x28] sm:$0xff] }
   0x4   :  { %1279 = vrot.lane.b32.xlu1 %v1278_v3, %s1441_s29  ;;  %1269 = vrot.lane.b32.xlu0 %v1278_v3, %s1442_s30  ;;  %s1443_s7 = smov 112   ;;  %s1444_s8 = smov 110   ;;  %v1323_v8 = vpack.i.bf16 %v39_v7, %v1529_v6  ;;  %v1448_v9 = vmov 0.0   ;;  %v1343_v10 = vpack.i.bf16 %v1529_v6, %v1509_v4  ;;  %v1450_v11 = vmov 0   ;;  %v400_v12 = vld [vmem:[%s1836_s2] sm:$0xff] }
   0x5   :  { %s1445_s9 = smov 111   ;;  %s1446_s10 = smov 95   ;;  %474 = vmatprep.mubr.f32.mxu0 %v1448_v9  ;;  %545 = vmatprep.mubr.f32.mxu1 %v1448_v9  ;;  %vm58_vm0 = vcmask 1039360   ;;  %vm98_vm1 = vcmask 1031168   ;;  %vm138_vm2 = vcmask 916480   ;;  %vm218_vm3 = vcmask 900096  }
   0x6   :  { %s1447_s11 = smov 96   ;;  %s1449_s16 = smov 94   ;;  %1358 = vset.pattern.permute.xlu0 %v1450_v11  ;;  %vm178_vm4 = vcmask 908288   ;;  %vm298_vm5 = vcmask 777216   ;;  %vm258_vm6 = vcmask 785408   ;;  %vm338_vm7 = vcmask 769024  }
   0x7   :  { %vm406_vm8 = vcmask 588800   ;;  %vm1452_vm9 = vmmov 0   ;;  %s1429_s24 = scalar_lea.hbm %s1840_s6, 16 }
   0x8   :  { %1284 = vrot.lane.b32.xlu1 %v1278_v3, %s1443_s7  ;;  %1274 = vrot.lane.b32.xlu0 %v1273_v5, %s1442_s30  ;;  %p1430_p0 = scmp.ne.s32.totalorder %s1840_s6, %s1429_s24  ;;  %p1433_p1 = scmp.lt.u32.totalorder %s1429_s24, %s1840_s6 }
   0xa   :  { %p1435_p2 = pnand %p1433_p1, %p1430_p0 }
   0xc   :  { %1294 = vrot.lane.b32.xlu1 %v1273_v5, %s1443_s7  ;;  %1289 = vrot.lane.b32.xlu0 %v1273_v5, %s1441_s29 }
  0x10   :  { %1304 = vrot.lane.b32.xlu1 %v1278_v3, %s1444_s8  ;;  %1299 = vrot.lane.b32.xlu0 %v1278_v3, %s1445_s9 }
  0x14   :  { %206 = vrot.lane.b32.xlu1 %v1502_v2, %s1444_s8  ;;  %1309 = vrot.lane.b32.xlu0 %v1273_v5, %s1445_s9 }
  0x18   :  { %1319 = vrot.lane.b32.xlu1 %v1278_v3, %s1446_s10  ;;  %1314 = vrot.lane.b32.xlu0 %v1278_v3, %s1447_s11 }
  0x1c   :  { %286 = vrot.lane.b32.xlu1 %v1502_v2, %s1446_s10  ;;  %246 = vrot.lane.b32.xlu0 %v1502_v2, %s1447_s11 }
  0x20   :  { %328 = vrot.lane.b32.xlu1 %v1492_v0, %s1449_s16  ;;  %1324 = vrot.lane.b32.xlu0 %v1323_v8, %s1442_s30 }
  0x24   :  { %1329 = vrot.lane.b32.xlu1 %v1323_v8, %s1441_s29  ;;  %330 = vrot.lane.b32.xlu0 %v1497_v1, %s1449_s16 }
  0x28   :  { %326 = vrot.lane.b32.xlu1 %v1502_v2, %s1449_s16  ;;  %1334 = vrot.lane.b32.xlu0 %v1323_v8, %s1443_s7 }
  0x2c   :  { %1344 = vrot.lane.b32.xlu1 %v1343_v10, %s1444_s8  ;;  %1339 = vrot.lane.b32.xlu0 %v1323_v8, %s1445_s9 }
  0x30   :  { %1349 = vrot.lane.b32.xlu1 %v1343_v10, %s1447_s11  ;;  %216 = vrot.lane.b32.xlu0 %v39_v7, %s1444_s8 }
  0x34   :  { %256 = vrot.lane.b32.xlu1 %v39_v7, %s1447_s11  ;;  %1354 = vrot.lane.b32.xlu0 %v1343_v10, %s1446_s10 }
  0x38   :  { %332 = vrot.lane.b32.xlu1 %v1509_v4, %s1449_s16  ;;  %296 = vrot.lane.b32.xlu0 %v39_v7, %s1446_s10 }
  0x3c   :  { %336 = vrot.lane.b32.xlu1 %v39_v7, %s1449_s16  ;;  %334 = vrot.lane.b32.xlu0 %v1529_v6, %s1449_s16 }
  0x40   :  { %403 = vperm.xlu0 %1358, %v400_v12  }
  0x76   :  { %v1567_v13 = vpop.permute.xlu1 %1279  ;;  %v1569_v14 = vpop.permute.xlu0 %1269 }
  0x77   :  { %v1282_v15 = vunpack.i.h.bf16 %v1567_v13  ;;  %v1281_v16 = vunpack.i.l.bf16 %v1567_v13  ;;  %v1272_v17 = vunpack.i.h.bf16 %v1569_v14  ;;  %v1271_v18 = vunpack.i.l.bf16 %v1569_v14 }
  0x78   :  { %v1451_v13 = vmov 0.0|0.0  }
  0x79   :  { %v60_v19 = vsel %vm58_vm0, %v1271_v18, %v1272_v17  ;;  %v100_v26 = vsel %vm98_vm1, %v1281_v16, %v1282_v15 }
  0x7a   :  { %v1578_v20 = vpop.permute.xlu1 %1284  ;;  %v1580_v21 = vpop.permute.xlu0 %1274  ;;  %v1177_v22 = vpack.c.bf16 %v60_v19, %v1492_v0 }
  0x7b   :  { %v1287_v23 = vunpack.i.h.bf16 %v1578_v20  ;;  %v1286_v24 = vunpack.i.l.bf16 %v1578_v20  ;;  %v1276_v25 = vunpack.i.l.bf16 %v1580_v21  ;;  %v1277_v3 = vunpack.i.h.bf16 %v1580_v21 }
  0x7c   :  { %1178 = vmatprep.subr.bf16.mxu0 %v1177_v22 }
  0x7d   :  { %v59_v27 = vsel %vm58_vm0, %v1276_v25, %v1271_v18  ;;  %v140_v28 = vsel %vm138_vm2, %v1286_v24, %v1287_v23  ;;  %v61_v11 = vsel %vm58_vm0, %v1272_v17, %v1277_v3 }
  0x7e   :  { %v1593_v29 = vpop.permute.xlu1 %1294  ;;  %v1595_v30 = vpop.permute.xlu0 %1289  ;;  %v1179_v31 = vpack.c.bf16 %v59_v27, %v1502_v2  ;;  %v1181_v32 = vpack.c.bf16 %v140_v28, %v100_v26  ;;  %v1195_v26 = vpack.c.bf16 %v61_v11, %v1497_v1 }
  0x7f   :  { %v1296_v33 = vunpack.i.l.bf16 %v1593_v29  ;;  %v1291_v34 = vunpack.i.l.bf16 %v1595_v30  ;;  %v1292_v18 = vunpack.i.h.bf16 %v1595_v30 }
  0x80   :  { %1180 = vmatpush1.bf16.msra.mxu0 %v1179_v31 }
  0x81   :  { %1182 = vmatprep.subr.bf16.mxu0 %v1181_v32  ;;  %v99_v35 = vsel %vm98_vm1, %v1291_v34, %v1281_v16  ;;  %v139_v36 = vsel %vm138_vm2, %v1296_v33, %v1286_v24  ;;  %v1297_v24 = vunpack.i.h.bf16 %v1593_v29  ;;  %v101_v29 = vsel %vm98_vm1, %v1282_v15, %v1292_v18 }
  0x82   :  { %v1602_v37 = vpop.permute.xlu1 %1304  ;;  %v1604_v38 = vpop.permute.xlu0 %1299  ;;  %v1183_v39 = vpack.c.bf16 %v139_v36, %v99_v35 }
  0x83   :  { %v1307_v40 = vunpack.i.h.bf16 %v1602_v37  ;;  %v1306_v41 = vunpack.i.l.bf16 %v1602_v37  ;;  %v1302_v42 = vunpack.i.h.bf16 %v1604_v38  ;;  %v1301_v43 = vunpack.i.l.bf16 %v1604_v38 }
  0x84   :  { %1184 = vmatpush1.bf16.msra.mxu0 %v1183_v39  ;;  %v141_v33 = vsel %vm138_vm2, %v1287_v23, %v1297_v24 }
  0x85   :  { %v180_v44 = vsel %vm178_vm4, %v1301_v43, %v1302_v42  ;;  %v220_v45 = vsel %vm218_vm3, %v1306_v41, %v1307_v40 }
  0x86   :  { %v207_v46 = vpop.permute.xlu1 %206  ;;  %v1616_v47 = vpop.permute.xlu0 %1309  ;;  %v1185_v48 = vpack.c.bf16 %v220_v45, %v180_v44 }
  0x87   :  { %v219_v49 = vsel %vm218_vm3, %v207_v46, %v1306_v41  ;;  %v1311_v50 = vunpack.i.l.bf16 %v1616_v47  ;;  %v1312_v36 = vunpack.i.h.bf16 %v1616_v47 }
  0x88   :  { %1186 = vmatprep.subr.bf16.mxu0 %v1185_v48 }
  0x89   :  { %v179_v51 = vsel %vm178_vm4, %v1311_v50, %v1301_v43  ;;  %v1199_v43 = vpack.c.bf16 %v141_v33, %v101_v29 }
  0x8a   :  { %v1621_v52 = vpop.permute.xlu1 %1319  ;;  %v1623_v53 = vpop.permute.xlu0 %1314  ;;  %v1187_v54 = vpack.c.bf16 %v219_v49, %v179_v51  ;;  %v181_v51 = vsel %vm178_vm4, %v1302_v42, %v1312_v36 }
  0x8b   :  { %v1322_v55 = vunpack.i.h.bf16 %v1621_v52  ;;  %v1321_v56 = vunpack.i.l.bf16 %v1621_v52  ;;  %v1317_v57 = vunpack.i.h.bf16 %v1623_v53  ;;  %v1316_v58 = vunpack.i.l.bf16 %v1623_v53 }
  0x8c   :  { %1188 = vmatpush1.bf16.msra.mxu0 %v1187_v54 }
  0x8d   :  { %v260_v59 = vsel %vm258_vm6, %v1316_v58, %v1317_v57  ;;  %v300_v60 = vsel %vm298_vm5, %v1321_v56, %v1322_v55 }
  0x8e   :  { %v287_v61 = vpop.permute.xlu1 %286  ;;  %v247_v62 = vpop.permute.xlu0 %246  ;;  %v1189_v63 = vpack.c.bf16 %v300_v60, %v260_v59 }
  0x8f   :  { %v299_v0 = vsel %vm298_vm5, %v287_v61, %v1321_v56  ;;  %v259_v2 = vsel %vm258_vm6, %v247_v62, %v1316_v58 }
  0x90   :  { %v1191_v5 = vpack.c.bf16 %v299_v0, %v259_v2  ;;  %1190 = vmatprep.subr.bf16.mxu0 %v1189_v63 }
  0x92   :  { %v329_v7 = vpop.permute.xlu1 %328  ;;  %v1325_v8 = vpop.permute.xlu0 %1324  ;;  %1192 = vmatpush1.bf16.msra.mxu0 %v1191_v5 }
  0x93   :  { %v1326_v10 = vunpack.i.l.bf16 %v1325_v8  ;;  %v1327_v12 = vunpack.i.h.bf16 %v1325_v8 }
  0x95   :  { %v62_v16 = vsel %vm58_vm0, %v1277_v3, %v1326_v10  ;;  %v63_v17 = vsel %vm58_vm0, %v1326_v10, %v1327_v12 }
  0x96   :  { %v1330_v19 = vpop.permute.xlu1 %1329  ;;  %v1643_v22 = vpop.permute.xlu0 %330  ;;  %v1193_v21 = vpack.c.bf16 %v62_v16, %v1509_v4  ;;  %v1654_v4 = vld [vmem:[%s1835_s1] sm:$0xff]  ;;  %v1210_v34 = vpack.c.bf16 %v63_v17, %v1529_v6 }
  0x97   :  { %v340_v25 = vsel %vm338_vm7, %v329_v7, %v1643_v22  ;;  %v1332_v14 = vunpack.i.h.bf16 %v1330_v19  ;;  %v1331_v27 = vunpack.i.l.bf16 %v1330_v19 }
  0x98   :  { %426 = vmatprep.subr.mxu0 %v340_v25  ;;  %1194 = vmatprep.subr.bf16.mxu1 %v1193_v21 }
  0x99   :  { %1196 = vmatpush1.bf16.msra.mxu1 %v1195_v26  ;;  %v103_v35 = vsel %vm98_vm1, %v1331_v27, %v1332_v14  ;;  %v102_v15 = vsel %vm98_vm1, %v1292_v18, %v1331_v27 }
  0x9a   :  { %v327_v28 = vpop.permute.xlu1 %326  ;;  %v1335_v30 = vpop.permute.xlu0 %1334 }
  0x9b   :  { %v1337_v1 = vunpack.i.h.bf16 %v1335_v30  ;;  %v1336_v31 = vunpack.i.l.bf16 %v1335_v30  ;;  %v339_v32 = vsel %vm338_vm7, %v327_v28, %v329_v7 }
  0x9c   :  { %427 = vmatpush1.msra.mxu0 %v339_v32 }
  0x9d   :  { %v143_v39 = vsel %vm138_vm2, %v1336_v31, %v1337_v1  ;;  %1209 = vmatprep.subr.bf16.mxu0 %v1451_v13  ;;  %1141 = vmatmul.mubr.msk.f32.vlgmr.msra.gmra.mrb[0].mxu0 %vm406_vm8, %v1654_v4  ;;  %v142_v20 = vsel %vm138_vm2, %v1297_v24, %v1336_v31 }
  0x9e   :  { %v1345_v41 = vpop.permute.xlu1 %1344  ;;  %v1340_v23 = vpop.permute.xlu0 %1339  ;;  %1211 = vmatpush3.bf16.msra.mxu0 %v1210_v34  ;;  %v1197_v6 = vpack.c.bf16 %v142_v20, %v102_v15  ;;  %1174 = vmatprep.mubr.msk.f32.mxu0 %vm1452_vm9, %v1448_v9  ;;  %v1213_v48 = vpack.c.bf16 %v143_v39, %v103_v35 }
  0x9f   :  { %v1347_v44 = vunpack.i.h.bf16 %v1345_v41  ;;  %v1346_v45 = vunpack.i.l.bf16 %v1345_v41  ;;  %v1342_v46 = vunpack.i.h.bf16 %v1340_v23  ;;  %v1341_v47 = vunpack.i.l.bf16 %v1340_v23  ;;  %1212 = vmatprep.subr.bf16.mxu0 %v1451_v13 }
  0xa0   :  { %1198 = vmatprep.subr.bf16.mxu1 %v1197_v6 }
  0xa1   :  { %1200 = vmatpush1.bf16.msra.mxu1 %v1199_v43  ;;  %v182_v49 = vsel %vm178_vm4, %v1312_v36, %v1341_v47  ;;  %v222_v50 = vsel %vm218_vm3, %v1346_v45, %v1347_v44  ;;  %v221_v54 = vsel %vm218_vm3, %v1307_v40, %v1346_v45  ;;  %v183_v62 = vsel %vm178_vm4, %v1341_v47, %v1342_v46 }
  0xa2   :  { %v1350_v56 = vpop.permute.xlu1 %1349  ;;  %v217_v58 = vpop.permute.xlu0 %216  ;;  %1214 = vmatpush3.bf16.msra.mxu0 %v1213_v48  ;;  %v1201_v59 = vpack.c.bf16 %v222_v50, %v182_v49  ;;  %v1203_v60 = vpack.c.bf16 %v221_v54, %v181_v51 }
  0xa3   :  { %v1352_v61 = vunpack.i.h.bf16 %v1350_v56  ;;  %v223_v63 = vsel %vm218_vm3, %v1347_v44, %v217_v58  ;;  %1215 = vmatprep.subr.bf16.mxu0 %v1451_v13  ;;  %v1351_v38 = vunpack.i.l.bf16 %v1350_v56 }
  0xa4   :  { %v1216_v0 = vpack.c.bf16 %v223_v63, %v183_v62  ;;  %1202 = vmatprep.subr.bf16.mxu1 %v1201_v59 }
  0xa5   :  { %1204 = vmatpush1.bf16.msra.mxu1 %v1203_v60  ;;  %v262_v3 = vsel %vm258_vm6, %v1351_v38, %v1352_v61  ;;  %v261_v7 = vsel %vm258_vm6, %v1317_v57, %v1351_v38 }
  0xa6   :  { %v257_v42 = vpop.permute.xlu1 %256  ;;  %v1355_v2 = vpop.permute.xlu0 %1354  ;;  %1217 = vmatpush3.bf16.msra.mxu0 %v1216_v0 }
  0xa7   :  { %v1357_v37 = vunpack.i.h.bf16 %v1355_v2  ;;  %v1356_v40 = vunpack.i.l.bf16 %v1355_v2  ;;  %1218 = vmatprep.subr.bf16.mxu0 %v1451_v13  ;;  %v263_v18 = vsel %vm258_vm6, %v1352_v61, %v257_v42  ;;  %v933_v13 = vld [vmem:[%s1838_s4] sm:$0xff] }
  0xa9   :  { %v302_v5 = vsel %vm298_vm5, %v1356_v40, %v1357_v37  ;;  %v301_v8 = vsel %vm298_vm5, %v1322_v55, %v1356_v40 }
  0xaa   :  { %v333_v10 = vpop.permute.xlu1 %332  ;;  %v297_v11 = vpop.permute.xlu0 %296  ;;  %v1205_v12 = vpack.c.bf16 %v302_v5, %v262_v3  ;;  %v1207_v16 = vpack.c.bf16 %v301_v8, %v261_v7 }
  0xab   :  { %v303_v19 = vsel %vm298_vm5, %v1357_v37, %v297_v11  ;;  %v341_v52 = vsel %vm338_vm7, %v1643_v22, %v333_v10 }
  0xac   :  { %v1219_v21 = vpack.c.bf16 %v303_v19, %v263_v18  ;;  %1206 = vmatprep.subr.bf16.mxu1 %v1205_v12 }
  0xad   :  { %1208 = vmatpush1.bf16.msra.mxu1 %v1207_v16 }
  0xae   :  { %v337_v24 = vpop.permute.xlu1 %336  ;;  %v335_v25 = vpop.permute.xlu0 %334  ;;  %1220 = vmatpush3.bf16.msra.mxu0 %v1219_v21 }
  0xaf   :  { %v342_v53 = vsel %vm338_vm7, %v333_v10, %v335_v25  ;;  %1172 = vmatprep.subr.mxu0 %v1448_v9  ;;  %v343_v55 = vsel %vm338_vm7, %v335_v25, %v337_v24 }
  0xb0   :  { %497 = vmatprep.subr.mxu1 %v342_v53 }
  0xb1   :  { %498 = vmatpush1.msra.mxu1 %v341_v52 }
  0xb2   :  { %1142 = vmatmul.mubr.msk.f32.vlgmr.msra.gmra.mrb[0].mxu1 %vm406_vm8, %v1654_v4  ;;  %1173 = vmatpush3.msra.mxu0 %v343_v55 }
  0xb3   :  { %1175 = vmatmul.mubr.msk.f32.vlgmr.msra.gmra.mrb[2].mxu0 %vm406_vm8, %v1654_v4  ;;  %1006 = vmatprep.mubr.f32.mxu1 %v1448_v9 }
  0xb4   :  { %1077 = vmatprep.mubr.f32.mxu0 %v1448_v9 }
  0xbf   :  { %v404_v14 = vpop.permute.xlu0 %403 }
 0x170   :  { %v476_v57 = vpop.f32.mrb[0].mxu0 }
 0x171   :  { %v478_v26 = vpop.f32.mrb[1].mxu0  ;;  %v477_v32 = vadd.f32 %v476_v57, %v404_v14 }
 0x172   :  { %v479_v17 = vadd.f32 %v478_v26, %v404_v14 }
 0x173   :  { %v622_v35 = vmax.f32 %v477_v32, 0.0 }
 0x174   :  { %v623_v22 = vmax.f32 %v479_v17, 0.0 }
 0x185   :  { %v547_v27 = vpop.f32.mrb[0].mxu1 }
 0x186   :  { %v548_v28 = vadd.f32 %v547_v27, %v404_v14  ;;  %v549_v30 = vpop.f32.mrb[1].mxu1  ;;  %v618_v29 = vpop.f32.mrb[2].mxu0 }
 0x187   :  { %v550_v1 = vadd.f32 %v549_v30, %v404_v14  ;;  %v1176_v31 = vpop.f32.mrb[3].mxu0  ;;  %v619_v36 = vadd.f32 %v618_v29, %v404_v14 }
 0x188   :  { %v1703_v33 = vmax.f32 %v548_v28, 0.0 }
 0x189   :  { %v1705_v34 = vmax.f32 %v550_v1, 0.0  ;;  %v626_v39 = vmax.f32 %v619_v36, 0.0 }
 0x18a   :  { %v1374_v4 = vpack.i.bf16 %v1703_v33, %v623_v22 }
 0x18b   :  { %v1384_v9 = vpack.i.bf16 %v1705_v34, %v622_v35 }
 0x18c   :  { %1375 = vrot.lane.b32.xlu0 %v1374_v4, %s1443_s7  ;;  %1360 = vrot.lane.b32.xlu1 %v1374_v4, %s1442_s30 }
 0x190   :  { %1385 = vrot.lane.b32.xlu0 %v1384_v9, %s1443_s7  ;;  %1365 = vrot.lane.b32.xlu1 %v1384_v9, %s1442_s30 }
 0x194   :  { %1395 = vrot.lane.b32.xlu0 %v1374_v4, %s1444_s8  ;;  %1370 = vrot.lane.b32.xlu1 %v1374_v4, %s1441_s29 }
 0x198   :  { %1405 = vrot.lane.b32.xlu0 %v1384_v9, %s1444_s8  ;;  %1380 = vrot.lane.b32.xlu1 %v1384_v9, %s1441_s29 }
 0x19c   :  { %1415 = vrot.lane.b32.xlu0 %v1374_v4, %s1446_s10  ;;  %1390 = vrot.lane.b32.xlu1 %v1374_v4, %s1445_s9 }
 0x1a0   :  { %1425 = vrot.lane.b32.xlu0 %v1384_v9, %s1446_s10  ;;  %1400 = vrot.lane.b32.xlu1 %v1384_v9, %s1445_s9 }
 0x1a4   :  { %658 = vrot.lane.b32.xlu0 %v626_v39, %s1442_s30  ;;  %1410 = vrot.lane.b32.xlu1 %v1374_v4, %s1447_s11 }
 0x1a8   :  { %722 = vrot.lane.b32.xlu0 %v626_v39, %s1443_s7  ;;  %1420 = vrot.lane.b32.xlu1 %v1384_v9, %s1447_s11 }
 0x1ac   :  { %786 = vrot.lane.b32.xlu0 %v626_v39, %s1444_s8  ;;  %876 = vrot.lane.b32.xlu1 %v623_v22, %s1449_s16 }
 0x1b0   :  { %850 = vrot.lane.b32.xlu0 %v626_v39, %s1446_s10  ;;  %690 = vrot.lane.b32.xlu1 %v626_v39, %s1441_s29 }
 0x1b4   :  { %878 = vrot.lane.b32.xlu0 %v1703_v33, %s1449_s16  ;;  %754 = vrot.lane.b32.xlu1 %v626_v39, %s1445_s9 }
 0x1b8   :  { %880 = vrot.lane.b32.xlu0 %v1705_v34, %s1449_s16  ;;  %818 = vrot.lane.b32.xlu1 %v626_v39, %s1447_s11 }
 0x1bc   :  { %936 = vperm.xlu0 %1358, %v933_v13   ;;  %874 = vrot.lane.b32.xlu1 %v622_v35, %s1449_s16 }
 0x1c0   :  { %882 = vrot.lane.b32.xlu1 %v626_v39, %s1449_s16 }
 0x1fe   :  { %v1740_v15 = vpop.permute.xlu0 %1375  ;;  %v1361_v20 = vpop.permute.xlu1 %1360 }
 0x1ff   :  { %v1363_v41 = vunpack.i.h.bf16 %v1361_v20  ;;  %v1362_v23 = vunpack.i.l.bf16 %v1361_v20  ;;  %v1378_v47 = vunpack.i.h.bf16 %v1740_v15  ;;  %v1377_v48 = vunpack.i.l.bf16 %v1740_v15 }
 0x201   :  { %v661_v6 = vsel %vm58_vm0, %v1362_v23, %v1363_v41  ;;  %v725_v61 = vsel %vm138_vm2, %v1377_v48, %v1378_v47 }
 0x202   :  { %v1743_v43 = vpop.permute.xlu0 %1385  ;;  %v1366_v44 = vpop.permute.xlu1 %1365  ;;  %v1221_v45 = vpack.c.bf16 %v661_v6, %v623_v22 }
 0x203   :  { %v1367_v46 = vunpack.i.l.bf16 %v1366_v44  ;;  %v1387_v59 = vunpack.i.l.bf16 %v1743_v43  ;;  %v1368_v18 = vunpack.i.h.bf16 %v1366_v44  ;;  %v1388_v6 = vunpack.i.h.bf16 %v1743_v43 }
 0x204   :  { %1222 = vmatprep.subr.bf16.mxu1 %v1221_v45 }
 0x205   :  { %v660_v49 = vsel %vm58_vm0, %v1367_v46, %v1362_v23  ;;  %v724_v42 = vsel %vm138_vm2, %v1387_v59, %v1377_v48  ;;  %v662_v26 = vsel %vm58_vm0, %v1363_v41, %v1368_v18 }
 0x206   :  { %v1223_v50 = vpack.c.bf16 %v660_v49, %v622_v35  ;;  %v1748_v51 = vpop.permute.xlu0 %1395  ;;  %v1750_v54 = vpop.permute.xlu1 %1370  ;;  %v1239_v1 = vpack.c.bf16 %v662_v26, %v1703_v33 }
 0x207   :  { %v1373_v56 = vunpack.i.h.bf16 %v1750_v54  ;;  %v1372_v58 = vunpack.i.l.bf16 %v1750_v54  ;;  %v1398_v2 = vunpack.i.h.bf16 %v1748_v51  ;;  %v1397_v37 = vunpack.i.l.bf16 %v1748_v51 }
 0x208   :  { %1224 = vmatpush1.bf16.msra.mxu1 %v1223_v50 }
 0x209   :  { %v693_v60 = vsel %vm98_vm1, %v1372_v58, %v1373_v56  ;;  %v789_v16 = vsel %vm218_vm3, %v1397_v37, %v1398_v2 }
 0x20a   :  { %v1761_v62 = vpop.permute.xlu0 %1405  ;;  %v1381_v63 = vpop.permute.xlu1 %1380  ;;  %v1225_v0 = vpack.c.bf16 %v725_v61, %v693_v60 }
 0x20b   :  { %v1382_v38 = vunpack.i.l.bf16 %v1381_v63  ;;  %v1407_v11 = vunpack.i.l.bf16 %v1761_v62  ;;  %v1383_v20 = vunpack.i.h.bf16 %v1381_v63  ;;  %v1408_v59 = vunpack.i.h.bf16 %v1761_v62 }
 0x20c   :  { %1226 = vmatprep.subr.bf16.mxu1 %v1225_v0 }
 0x20d   :  { %v692_v40 = vsel %vm98_vm1, %v1382_v38, %v1372_v58  ;;  %v788_v53 = vsel %vm218_vm3, %v1407_v11, %v1397_v37  ;;  %v694_v44 = vsel %vm98_vm1, %v1373_v56, %v1383_v20  ;;  %v726_v58 = vsel %vm138_vm2, %v1378_v47, %v1388_v6 }
 0x20e   :  { %v1227_v3 = vpack.c.bf16 %v724_v42, %v692_v40  ;;  %v1767_v5 = vpop.permute.xlu0 %1415  ;;  %v1391_v7 = vpop.permute.xlu1 %1390  ;;  %v1243_v43 = vpack.c.bf16 %v726_v58, %v694_v44  ;;  %v790_v15 = vsel %vm218_vm3, %v1398_v2, %v1408_v59  ;;  %v896_v2 = vld [vmem:[%s1837_s3] sm:$0xff] }
 0x20f   :  { %v1393_v8 = vunpack.i.h.bf16 %v1391_v7  ;;  %v1392_v10 = vunpack.i.l.bf16 %v1391_v7  ;;  %v1418_v52 = vunpack.i.h.bf16 %v1767_v5  ;;  %v1417_v55 = vunpack.i.l.bf16 %v1767_v5 }
 0x210   :  { %1228 = vmatpush1.bf16.msra.mxu1 %v1227_v3 }
 0x211   :  { %v757_v12 = vsel %vm178_vm4, %v1392_v10, %v1393_v8  ;;  %v853_v4 = vsel %vm298_vm5, %v1417_v55, %v1418_v52 }
 0x212   :  { %v1774_v19 = vpop.permute.xlu0 %1425  ;;  %v1401_v21 = vpop.permute.xlu1 %1400  ;;  %v1229_v24 = vpack.c.bf16 %v789_v16, %v757_v12 }
 0x213   :  { %v1402_v25 = vunpack.i.l.bf16 %v1401_v21  ;;  %v1427_v31 = vunpack.i.l.bf16 %v1774_v19  ;;  %v1403_v45 = vunpack.i.h.bf16 %v1401_v21  ;;  %v1428_v47 = vunpack.i.h.bf16 %v1774_v19 }
 0x214   :  { %1230 = vmatprep.subr.bf16.mxu1 %v1229_v24  ;;  %v1090_v24 = vlaneseq }
 0x215   :  { %v756_v57 = vsel %vm178_vm4, %v1402_v25, %v1392_v10  ;;  %v852_v13 = vsel %vm298_vm5, %v1427_v31, %v1417_v55  ;;  %v758_v61 = vsel %vm178_vm4, %v1393_v8, %v1403_v45  ;;  %v854_v8 = vsel %vm298_vm5, %v1418_v52, %v1428_v47  ;;  %v1088_v52 = vld [vmem:[%s1839_s5] sm:$0xf] }
 0x216   :  { %v1231_v14 = vpack.c.bf16 %v788_v53, %v756_v57  ;;  %v659_v17 = vpop.permute.xlu0 %658  ;;  %v1411_v27 = vpop.permute.xlu1 %1410  ;;  %v1247_v37 = vpack.c.bf16 %v790_v15, %v758_v61  ;;  %v1091_v25 = vshrl.u32 %v1090_v24, 7 }
 0x217   :  { %v663_v22 = vsel %vm58_vm0, %v1368_v18, %v659_v17  ;;  %v1413_v28 = vunpack.i.h.bf16 %v1411_v27  ;;  %v1412_v30 = vunpack.i.l.bf16 %v1411_v27 }
 0x218   :  { %v1237_v29 = vpack.c.bf16 %v663_v22, %v1705_v34  ;;  %1232 = vmatpush1.bf16.msra.mxu1 %v1231_v14  ;;  %v1092_v53 = vsub.s32 0, %v1091_v25  ;;  %v1096_v55 = vsub.s32 1, %v1091_v25 }
 0x219   :  { %v821_v32 = vsel %vm258_vm6, %v1412_v30, %v1413_v28 }
 0x21a   :  { %v723_v35 = vpop.permute.xlu0 %722  ;;  %v1421_v9 = vpop.permute.xlu1 %1420  ;;  %1238 = vmatprep.subr.bf16.mxu0 %v1237_v29  ;;  %v1233_v36 = vpack.c.bf16 %v853_v4, %v821_v32  ;;  %v1093_v17 = vrot.slane %v1088_v52, %v1092_v53 }
 0x21b   :  { %v1422_v39 = vunpack.i.l.bf16 %v1421_v9  ;;  %1240 = vmatpush1.bf16.msra.mxu0 %v1239_v1  ;;  %v727_v49 = vsel %vm138_vm2, %v1388_v6, %v723_v35  ;;  %v1423_v54 = vunpack.i.h.bf16 %v1421_v9  ;;  %v1104_v1 = vsub.s32 3, %v1091_v25 }
 0x21c   :  { %1234 = vmatprep.subr.bf16.mxu1 %v1233_v36 }
 0x21d   :  { %v820_v34 = vsel %vm258_vm6, %v1422_v39, %v1412_v30  ;;  %v822_v40 = vsel %vm258_vm6, %v1413_v28, %v1423_v54  ;;  %v1097_v28 = vrot.slane %v1088_v52, %v1096_v55  ;;  %v1100_v30 = vsub.s32 2, %v1091_v25 }
 0x21e   :  { %v1235_v41 = vpack.c.bf16 %v852_v13, %v820_v34  ;;  %v787_v33 = vpop.permute.xlu0 %786  ;;  %v877_v23 = vpop.permute.xlu1 %876  ;;  %v1251_v51 = vpack.c.bf16 %v854_v8, %v822_v40  ;;  %v1105_v34 = vrot.slane %v1088_v52, %v1104_v1 }
 0x21f   :  { %v791_v0 = vsel %vm218_vm3, %v1408_v59, %v787_v33  ;;  %v1101_v36 = vrot.slane %v1088_v52, %v1100_v30 }
 0x220   :  { %1236 = vmatpush1.bf16.msra.mxu1 %v1235_v41 }
 0x222   :  { %v851_v46 = vpop.permute.xlu0 %850  ;;  %v691_v48 = vpop.permute.xlu1 %690 }
 0x223   :  { %v695_v50 = vsel %vm98_vm1, %v1383_v20, %v691_v48  ;;  %v855_v5 = vsel %vm298_vm5, %v1428_v47, %v851_v46 }
 0x224   :  { %v1241_v60 = vpack.c.bf16 %v727_v49, %v695_v50 }
 0x226   :  { %v879_v63 = vpop.permute.xlu0 %878  ;;  %v755_v56 = vpop.permute.xlu1 %754  ;;  %1242 = vmatprep.subr.bf16.mxu0 %v1241_v60 }
 0x227   :  { %v759_v38 = vsel %vm178_vm4, %v1403_v45, %v755_v56  ;;  %1244 = vmatpush1.bf16.msra.mxu0 %v1243_v43  ;;  %v885_v42 = vsel %vm338_vm7, %v877_v23, %v879_v63 }
 0x228   :  { %v1245_v62 = vpack.c.bf16 %v791_v0, %v759_v38  ;;  %958 = vmatprep.subr.mxu1 %v885_v42 }
 0x22a   :  { %v819_v3 = vpop.permute.xlu1 %818  ;;  %1246 = vmatprep.subr.bf16.mxu0 %v1245_v62  ;;  %v881_v16 = vpop.permute.xlu0 %880 }
 0x22b   :  { %v823_v7 = vsel %vm258_vm6, %v1423_v54, %v819_v3  ;;  %1248 = vmatpush1.bf16.msra.mxu0 %v1247_v37  ;;  %v886_v21 = vsel %vm338_vm7, %v879_v63, %v881_v16 }
 0x22c   :  { %v1249_v10 = vpack.c.bf16 %v855_v5, %v823_v7 }
 0x22e   :  { %v875_v11 = vpop.permute.xlu1 %874  ;;  %1250 = vmatprep.subr.bf16.mxu0 %v1249_v10 }
 0x22f   :  { %v884_v12 = vsel %vm338_vm7, %v875_v11, %v877_v23  ;;  %1252 = vmatpush1.bf16.msra.mxu0 %v1251_v51 }
 0x230   :  { %959 = vmatpush1.msra.mxu1 %v884_v12 }
 0x231   :  { %1144 = vmatmul.mubr.msk.f32.vlgmr.msra.gmra.mrb[2].mxu1 %vm406_vm8, %v896_v2 }
 0x232   :  { %v883_v18 = vpop.permute.xlu1 %882 }
 0x233   :  { %v887_v19 = vsel %vm338_vm7, %v881_v16, %v883_v18 }
 0x234   :  { %1029 = vmatprep.subr.mxu0 %v887_v19 }
 0x235   :  { %1030 = vmatpush1.msra.mxu0 %v886_v21 }
 0x236   :  { %1145 = vmatmul.mubr.msk.f32.vlgmr.msra.gmra.mrb[4].mxu0 %vm406_vm8, %v896_v2 }
 0x23b   :  { %v937_v57 = vpop.permute.xlu0 %936 }
 0x304   :  { %v1008_v26 = vpop.f32.mrb[2].mxu1 }
 0x305   :  { %v1009_v14 = vadd.f32 %v1008_v26, %v937_v57  ;;  %v1010_v27 = vpop.f32.mrb[3].mxu1 }
 0x306   :  { %v1011_v22 = vadd.f32 %v1010_v27, %v937_v57 }
 0x307   :  { %v1084_v29 = vmax.f32 %v1009_v14, 0.0 }
 0x308   :  { %v1085_v31 = vmax.f32 %v1011_v22, 0.0 }
 0x309   :  { %v1110_v32 = vmul.f32 %v1093_v17, %v1084_v29  ;;  %v1079_v4 = vpop.f32.mrb[4].mxu0 }
 0x30a   :  { %v1111_v35 = vmul.f32 %v1097_v28, %v1085_v31  ;;  %v1080_v9 = vadd.f32 %v1079_v4, %v937_v57  ;;  %v1081_v39 = vpop.f32.mrb[5].mxu0 }
 0x30b   :  { %v1082_v13 = vadd.f32 %v1081_v39, %v937_v57 }
 0x30c   :  { %v1114_v20 = vadd.f32 %v1111_v35, %v1110_v32  ;;  %v1086_v41 = vmax.f32 %v1080_v9, 0.0 }
 0x30d   :  { %v1087_v33 = vmax.f32 %v1082_v13, 0.0 }
 0x30e   :  { %v1112_v23 = vmul.f32 %v1101_v36, %v1086_v41 }
 0x30f   :  { %v1113_v6 = vmul.f32 %v1105_v34, %v1087_v33 }
 0x310   :  { %v1115_v44 = vadd.f32 %v1114_v20, %v1112_v23 }
 0x312   :  { %v1116_v45 = vadd.f32 %v1115_v44, %v1113_v6 }
 0x314   :  { %1117 = vadd.xlane.f32.xlu1 %v1116_v45 }
 0x3a1   :  { %v1118_v46 = vpop.xlane.xlu1 %1117 }
 0x3a2   :  { %v1119_v48 = vrot.slane %v1118_v46, 4 }
 0x3a4   :  { %v1120_v49 = vadd.f32 %v1119_v48, %v1118_v46 }
 0x3a6   :  { %v1121_v50 = vrot.slane %v1120_v49, 2 }
 0x3a8   :  { %v1122_v58 = vadd.f32 %v1121_v50, %v1120_v49 }
 0x3aa   :  { %v1123_v59 = vrot.slane %v1122_v58, 1 }
 0x3ac   :  { %v1124_v60 = vadd.f32 %v1123_v59, %v1122_v58 }
 0x3ae   :  { %1253 = vpush %v1124_v60 }
 0x3df   :  { %s1254_s5 = spop %1253 }
 0x3e0   :  { %1127 = sst [smem:[#allocation5]] %s1254_s5 }
 0x3e1   :  { %1438 = shalt.err (!%p1435_p2)
}
 0x3e2   :  { %s1453_s29 = smov [#allocation5]  }
 0x3e3   :  { %1135 = dma.smem_to_hbm %s1453_s29, 16, %s1840_s6, [#allocation6]  }
 0x3e4   :  { %1439 = dma.done.wait [#allocation6], 16  }
 0x3e5   :  { %1440 = vsyncadd [#allocation6], 4294967280 }
 0x3e6   :  { %1139 = sfence }
 0x3e7   :  { %1140 = vsyncpa [#allocation6], 1 }

</bundles_post_ra>
